<compile_context>
chip_gen: v5e
topology: v5e:2x2
jax: 0.10.0
libtpu: 0.0.40
codegen_flags: <defaults>
</compile_context>

<pallas_src>
import functools
from math import sqrt

import jax
import jax.numpy as jnp
from jax.experimental import pallas as pl
from jax.experimental.pallas import tpu as pltpu

LANE = 128  # lane (last-dim) alignment


def _round_up(n: int, m: int) -> int:
    return ((n + m - 1) // m) * m


def _cdiv(a: int, b: int) -> int:
    return -(-a // b)


def _vmem_capacity_bytes() -> int:
    """Per-core VMEM capacity; conservative 64 MiB fallback (v7x per-TC)."""
    try:
        info = pltpu.get_tpu_info()
        cap = getattr(info, "vmem_capacity_bytes", None)
        if cap:
            return int(cap)
    except Exception:
        pass
    return 64 * 1024 * 1024


def _fused_mlp_kernel(x_ref, *refs, n_layers: int):
    """Fused MLP. refs = (w0, b0, w1, b1, ..., w_{L-1}, b_{L-1}, o_ref).

    x_ref : (tile_b, pad_in)          VMEM, compute dtype (bf16)
    w_i   : (pad_in_i, pad_out_i)     VMEM, compute dtype (already transposed)
    b_i   : (1, pad_out_i)            VMEM, f32
    o_ref : (tile_b, pad_out_last)    VMEM, f32
    """
    o_ref = refs[-1]
    x = x_ref[...]
    for i in range(n_layers):
        w = refs[2 * i][...]
        b = refs[2 * i + 1][...]
        y = jnp.dot(x, w, preferred_element_type=jnp.float32) + b
        if i < n_layers - 1:
            y = jnp.maximum(y, 0.0)          # ReLU on hidden layers only
            x = y.astype(w.dtype)            # bf16 for the next MXU pass
        else:
            x = y                            # final layer stays f32
    o_ref[...] = x.astype(o_ref.dtype)


class PallasNet:
    """JAX/Pallas mirror of the PyTorch Net module (fused single-kernel fwd)."""

    def __init__(self, layers, key, compute_dtype=jnp.bfloat16):
        assert len(layers) >= 2, (
            'At least two layers are required (incl. input and output layer)')
        self.layers = list(layers)
        self.compute_dtype = compute_dtype
        # bf16 sublane packing needs 16-row granularity on the batch tile.
        self.sub = 16 if jnp.dtype(compute_dtype) == jnp.dtype(jnp.bfloat16) else 8
        self.padded = [_round_up(w, LANE) for w in self.layers]
        self._vmem_cap = _vmem_capacity_bytes()

        self.weights_t = []   # padded, transposed: (pad_in, pad_out), compute dtype
        self.biases = []      # padded, 2-D: (1, pad_out), f32
        self._true_dims = []  # (n_in, n_out) per layer

        for i in range(len(self.layers) - 1):
            n_in, n_out = self.layers[i], self.layers[i + 1]
            p_in, p_out = self.padded[i], self.padded[i + 1]
            a = 1 if i == 0 else 2
            key, sub = jax.random.split(key)
            # PyTorch init: weight = randn(n_out, n_in) * sqrt(a / n_in); bias = 0
            w = jax.random.normal(sub, (n_out, n_in), dtype=jnp.float32)
            w = w * sqrt(a / n_in)
            w_t = jnp.transpose(w)                                   # (n_in, n_out)
            w_t_pad = jnp.zeros((p_in, p_out), dtype=jnp.float32)
            w_t_pad = w_t_pad.at[:n_in, :n_out].set(w_t)
            self.weights_t.append(w_t_pad.astype(compute_dtype))
            self.biases.append(jnp.zeros((1, p_out), dtype=jnp.float32))
            self._true_dims.append((n_in, n_out))

        self._n_layers = len(self.weights_t)
        self._flat_params = []
        for w_t, b in zip(self.weights_t, self.biases):
            self._flat_params.append(w_t)
            self._flat_params.append(b)
        # jit the whole forward so pad / slice fuse with the pallas call.
        self._jit_forward = jax.jit(self._forward_impl)

    # ------------------------------------------------------------------ sizing
    def _param_bytes(self) -> int:
        wb = sum(int(w.size) * w.dtype.itemsize for w in self.weights_t)
        bb = sum(int(b.size) * b.dtype.itemsize for b in self.biases)
        return wb + bb

    def _vmem_needed_bytes(self, tile_b: int) -> int:
        cd_sz = jnp.dtype(self.compute_dtype).itemsize
        pad_in, pad_out = self.padded[0], self.padded[-1]
        in_pipe = 2 * tile_b * pad_in * cd_sz            # double-buffered x tiles
        out_pipe = 2 * tile_b * pad_out * 4              # double-buffered out tiles
        act = 2 * tile_b * max(self.padded) * 4          # live activations (f32+bf16)
        return self._param_bytes() + in_pipe + out_pipe + act

    def _vmem_limit_bytes(self, tile_b: int) -> int:
        needed = self._vmem_needed_bytes(tile_b)
        limit = int(needed * 1.25) + (4 << 20)           # headroom + internal scratch
        return int(min(max(limit, 16 << 20), self._vmem_cap))

    def _choose_tile(self, B: int):
        sub = self.sub
        if B < 2 * sub:
            tile_b = _round_up(max(B, 1), sub)
        else:
            # At least two grid steps (v7x: lets the "parallel" axis shard
            # across both TensorCores); up to 1024 rows per tile.
            tile_b = min(1024, _round_up(_cdiv(B, 2), sub))
        cap = int(0.9 * self._vmem_cap)
        # Shrink the tile if the VMEM budget is exceeded.
        while tile_b > sub and self._vmem_needed_bytes(tile_b) > cap:
            tile_b = max(sub, _round_up(tile_b // 2, sub))
        # TODO(synk): if the resident weights alone exceed the VMEM budget
        # (very wide layers on v7x's 64 MiB/TC), fall back to streaming weight
        # sub-tiles via an output-feature grid axis / pltpu.emit_pipeline.
        padded_batch = _round_up(B, tile_b)
        return tile_b, padded_batch

    # ------------------------------------------------------------------ kernel
    def _build_call(self, padded_batch: int, tile_b: int):
        n_layers = self._n_layers
        pad_in = self.padded[0]
        pad_out = self.padded[-1]
        cd_sz = jnp.dtype(self.compute_dtype).itemsize

        in_specs = [pl.BlockSpec((tile_b, pad_in), lambda i: (i, 0))]
        for _ in range(n_layers):
            # Whole-array, VMEM-resident, single-buffered (one DMA total; no
            # per-grid-step re-fetch / double buffering of constant blocks).
            in_specs.append(pl.BlockSpec(memory_space=pltpu.MemorySpace.VMEM))
            in_specs.append(pl.BlockSpec(memory_space=pltpu.MemorySpace.VMEM))

        flops = 2 * padded_batch * sum(
            self.padded[i] * self.padded[i + 1] for i in range(n_layers))
        bytes_accessed = (padded_batch * pad_in * cd_sz
                          + padded_batch * pad_out * 4
                          + self._param_bytes())
        cost = pl.CostEstimate(flops=flops, transcendentals=0,
                               bytes_accessed=bytes_accessed)

        kernel = functools.partial(_fused_mlp_kernel, n_layers=n_layers)
        return pl.pallas_call(
            kernel,
            out_shape=jax.ShapeDtypeStruct((padded_batch, pad_out), jnp.float32),
            grid=(padded_batch // tile_b,),
            in_specs=in_specs,
            out_specs=pl.BlockSpec((tile_b, pad_out), lambda i: (i, 0)),
            compiler_params=pltpu.CompilerParams(
                dimension_semantics=("parallel",),
                vmem_limit_bytes=self._vmem_limit_bytes(tile_b)),
            cost_estimate=cost,
        )

    # ----------------------------------------------------------------- forward
    def _forward_impl(self, x, *params):
        B, n_in = x.shape
        assert n_in == self.layers[0]
        pad_in = self.padded[0]
        n_out = self.layers[-1]

        tile_b, padded_batch = self._choose_tile(B)
        x_pad = jnp.pad(x.astype(self.compute_dtype),
                        ((0, padded_batch - B), (0, pad_in - n_in)))
        out_pad = self._build_call(padded_batch, tile_b)(x_pad, *params)
        return out_pad[:B, :n_out]

    def __call__(self, x):
        return self._jit_forward(x, *self._flat_params)

    def get_num_parameters(self):
        # True (unpadded) parameter count, matching the PyTorch module.
        return sum(n_in * n_out + n_out for (n_in, n_out) in self._true_dims)


def reference_forward(x, net: PallasNet):
    """Pure-JAX reference of the same forward pass (same dtypes as the kernel)."""
    cd = net.compute_dtype
    xr = x.astype(cd)
    for i, (n_in, n_out) in enumerate(net._true_dims):
        w = net.weights_t[i][:n_in, :n_out]                  # compute dtype
        b = net.biases[i][0, :n_out].astype(jnp.float32)
        y = jnp.dot(xr, w, preferred_element_type=jnp.float32) + b
        if i < net._n_layers - 1:
            y = jnp.maximum(y, 0.0)
            xr = y.astype(cd)
        else:
            xr = y
    return xr


if __name__ == "__main__":
    key = jax.random.PRNGKey(0)
    key, k_in, k_net = jax.random.split(key, 3)

    # Small MLP: input width 16, two hidden layers of 32, output width 8.
    layers = [16, 32, 32, 8]
    batch = 8

    net = PallasNet(layers, k_net)
    x = jax.random.normal(k_in, (batch, layers[0]), dtype=jnp.float32)

    out = jax.block_until_ready(net(x))
    ref = jax.block_until_ready(reference_forward(x, net))

    assert out.shape == (batch, layers[-1])
    assert jnp.allclose(out, ref, atol=1e-2, rtol=1e-2), "mismatch vs reference"
    assert net.get_num_parameters() == sum(
        layers[i] * layers[i + 1] + layers[i + 1] for i in range(len(layers) - 1))

    print("KERNEL_OK")
</pallas_src>

<mosaic_0001>
module attributes {stable_mosaic.version = 11 : i64} {
  func.func @_fused_mlp_kernel(%arg0: i32, %arg1: memref<16x128xbf16, #tpu.memory_space<vmem>>, %arg2: memref<128x128xbf16, #tpu.memory_space<vmem>>, %arg3: memref<1x128xf32, #tpu.memory_space<vmem>>, %arg4: memref<128x128xbf16, #tpu.memory_space<vmem>>, %arg5: memref<1x128xf32, #tpu.memory_space<vmem>>, %arg6: memref<128x128xbf16, #tpu.memory_space<vmem>>, %arg7: memref<1x128xf32, #tpu.memory_space<vmem>>, %arg8: memref<16x128xf32, #tpu.memory_space<vmem>>) attributes {dimension_semantics = [#tpu.dimension_semantics<parallel>], iteration_bounds = array<i64: 1>, scalar_prefetch = 0 : i64, scratch_operands = 0 : i64, tpu.core_type = #tpu.core_type<tc>, window_params = [{transform_indices = @transform_0, window_bounds = array<i64: 16, 128>}, {pipeline_mode = #tpu.pipeline_mode<synchronous>, transform_indices = @transform_1, window_bounds = array<i64: 128, 128>}, {pipeline_mode = #tpu.pipeline_mode<synchronous>, transform_indices = @transform_2, window_bounds = array<i64: 1, 128>}, {pipeline_mode = #tpu.pipeline_mode<synchronous>, transform_indices = @transform_3, window_bounds = array<i64: 128, 128>}, {pipeline_mode = #tpu.pipeline_mode<synchronous>, transform_indices = @transform_4, window_bounds = array<i64: 1, 128>}, {pipeline_mode = #tpu.pipeline_mode<synchronous>, transform_indices = @transform_5, window_bounds = array<i64: 128, 128>}, {pipeline_mode = #tpu.pipeline_mode<synchronous>, transform_indices = @transform_6, window_bounds = array<i64: 1, 128>}, {transform_indices = @transform_7, window_bounds = array<i64: 16, 128>}]} {
    %c0 = arith.constant 0 : index
    %c0_0 = arith.constant 0 : index
    %0 = vector.load %arg1[%c0, %c0_0] : memref<16x128xbf16, #tpu.memory_space<vmem>>, vector<16x128xbf16>
    %c0_1 = arith.constant 0 : index
    %c0_2 = arith.constant 0 : index
    %1 = vector.load %arg2[%c0_1, %c0_2] : memref<128x128xbf16, #tpu.memory_space<vmem>>, vector<128x128xbf16>
    %c0_3 = arith.constant 0 : index
    %c0_4 = arith.constant 0 : index
    %2 = vector.load %arg3[%c0_3, %c0_4] : memref<1x128xf32, #tpu.memory_space<vmem>>, vector<1x128xf32>
    %cst = arith.constant dense<0.000000e+00> : vector<16x128xf32>
    %3 = tpu.matmul %0, %1, %cst {dimension_numbers = #tpu.dot_dimension_numbers<[1], [0], [0], [1], [0, 0, 1, 1], [], []>} : vector<16x128xbf16>, vector<128x128xbf16>, vector<16x128xf32> -> vector<16x128xf32>
    %4 = vector.broadcast %2 : vector<1x128xf32> to vector<16x128xf32>
    %5 = arith.addf %3, %4 : vector<16x128xf32>
    %cst_5 = arith.constant 0.000000e+00 : f32
    %6 = vector.broadcast %cst_5 : f32 to vector<16x128xf32>
    %7 = arith.maximumf %5, %6 : vector<16x128xf32>
    %8 = arith.truncf %7 : vector<16x128xf32> to vector<16x128xbf16>
    %c0_6 = arith.constant 0 : index
    %c0_7 = arith.constant 0 : index
    %9 = vector.load %arg4[%c0_6, %c0_7] : memref<128x128xbf16, #tpu.memory_space<vmem>>, vector<128x128xbf16>
    %c0_8 = arith.constant 0 : index
    %c0_9 = arith.constant 0 : index
    %10 = vector.load %arg5[%c0_8, %c0_9] : memref<1x128xf32, #tpu.memory_space<vmem>>, vector<1x128xf32>
    %cst_10 = arith.constant dense<0.000000e+00> : vector<16x128xf32>
    %11 = tpu.matmul %8, %9, %cst_10 {dimension_numbers = #tpu.dot_dimension_numbers<[1], [0], [0], [1], [0, 0, 1, 1], [], []>} : vector<16x128xbf16>, vector<128x128xbf16>, vector<16x128xf32> -> vector<16x128xf32>
    %12 = vector.broadcast %10 : vector<1x128xf32> to vector<16x128xf32>
    %13 = arith.addf %11, %12 : vector<16x128xf32>
    %cst_11 = arith.constant 0.000000e+00 : f32
    %14 = vector.broadcast %cst_11 : f32 to vector<16x128xf32>
    %15 = arith.maximumf %13, %14 : vector<16x128xf32>
    %16 = arith.truncf %15 : vector<16x128xf32> to vector<16x128xbf16>
    %c0_12 = arith.constant 0 : index
    %c0_13 = arith.constant 0 : index
    %17 = vector.load %arg6[%c0_12, %c0_13] : memref<128x128xbf16, #tpu.memory_space<vmem>>, vector<128x128xbf16>
    %c0_14 = arith.constant 0 : index
    %c0_15 = arith.constant 0 : index
    %18 = vector.load %arg7[%c0_14, %c0_15] : memref<1x128xf32, #tpu.memory_space<vmem>>, vector<1x128xf32>
    %cst_16 = arith.constant dense<0.000000e+00> : vector<16x128xf32>
    %19 = tpu.matmul %16, %17, %cst_16 {dimension_numbers = #tpu.dot_dimension_numbers<[1], [0], [0], [1], [0, 0, 1, 1], [], []>} : vector<16x128xbf16>, vector<128x128xbf16>, vector<16x128xf32> -> vector<16x128xf32>
    %20 = vector.broadcast %18 : vector<1x128xf32> to vector<16x128xf32>
    %21 = arith.addf %19, %20 : vector<16x128xf32>
    %c0_17 = arith.constant 0 : index
    %c0_18 = arith.constant 0 : index
    %22 = vector.load %arg8[%c0_17, %c0_18] : memref<16x128xf32, #tpu.memory_space<vmem>>, vector<16x128xf32>
    tpu.vector_store %arg8[%c0_17, %c0_18], %21 {strides = array<i32>} : memref<16x128xf32, #tpu.memory_space<vmem>>, vector<16x128xf32>,
    return
  }
  func.func @transform_0(%arg0: i32) -> (i32, i32) {
    %c0_i32 = arith.constant 0 : i32
    %c0_i32_0 = arith.constant 0 : i32
    return %arg0, %c0_i32 : i32, i32
  }
  func.func @transform_1(%arg0: i32) -> (i32, i32) {
    %c0_i32 = arith.constant 0 : i32
    %c0_i32_0 = arith.constant 0 : i32
    %c0_i32_1 = arith.constant 0 : i32
    return %c0_i32, %c0_i32_0 : i32, i32
  }
  func.func @transform_2(%arg0: i32) -> (i32, i32) {
    %c0_i32 = arith.constant 0 : i32
    %c0_i32_0 = arith.constant 0 : i32
    %c0_i32_1 = arith.constant 0 : i32
    return %c0_i32, %c0_i32_0 : i32, i32
  }
  func.func @transform_3(%arg0: i32) -> (i32, i32) {
    %c0_i32 = arith.constant 0 : i32
    %c0_i32_0 = arith.constant 0 : i32
    %c0_i32_1 = arith.constant 0 : i32
    return %c0_i32, %c0_i32_0 : i32, i32
  }
  func.func @transform_4(%arg0: i32) -> (i32, i32) {
    %c0_i32 = arith.constant 0 : i32
    %c0_i32_0 = arith.constant 0 : i32
    %c0_i32_1 = arith.constant 0 : i32
    return %c0_i32, %c0_i32_0 : i32, i32
  }
  func.func @transform_5(%arg0: i32) -> (i32, i32) {
    %c0_i32 = arith.constant 0 : i32
    %c0_i32_0 = arith.constant 0 : i32
    %c0_i32_1 = arith.constant 0 : i32
    return %c0_i32, %c0_i32_0 : i32, i32
  }
  func.func @transform_6(%arg0: i32) -> (i32, i32) {
    %c0_i32 = arith.constant 0 : i32
    %c0_i32_0 = arith.constant 0 : i32
    %c0_i32_1 = arith.constant 0 : i32
    return %c0_i32, %c0_i32_0 : i32, i32
  }
  func.func @transform_7(%arg0: i32) -> (i32, i32) {
    %c0_i32 = arith.constant 0 : i32
    %c0_i32_0 = arith.constant 0 : i32
    return %arg0, %c0_i32 : i32, i32
  }
}

</mosaic_0001>

<bundles_post_ra>
// kernel: _forward_impl.1
= control target key start
LH: loop header
LB: loop body
LE: loop exit
PB: predicated region body
PF: predicated region fallthrough
CT: control target
= control target key end

     0   :  { %12 = vsyncpa [#allocation3], 0  ;;  %s622_s0 = inlined_call_operand.vmem [shape: bf16[16,128], index: 0, kind: input, shape index: {}]   ;;  %s623_s1 = inlined_call_operand.hbm [shape: bf16[128,128], index: 1, kind: input, shape index: {}]   ;;  %s624_s2 = inlined_call_operand.vmem [shape: f32[1,128], index: 2, kind: input, shape index: {}]   ;;  %s625_s3 = inlined_call_operand.hbm [shape: bf16[128,128], index: 3, kind: input, shape index: {}]   ;;  %s626_s4 = inlined_call_operand.vmem [shape: f32[1,128], index: 4, kind: input, shape index: {}]   ;;  %s627_s5 = inlined_call_operand.hbm [shape: bf16[128,128], index: 5, kind: input, shape index: {}]   ;;  %s628_s6 = inlined_call_operand.vmem [shape: f32[1,128], index: 6, kind: input, shape index: {}]   ;;  %s629_s7 = inlined_call_operand.vmem [shape: f32[16,128], index: 7, kind: output, shape index: {}]  }
   0x1   :  { %13 = vsyncpa [#allocation5], 0  ;;  %s35_s26 = sshll.u32 %s625_s3, 4  ;;  %s550_s27 = smov [#allocation4]   ;;  %s36_s26 = int_to_ptr.hbm [resolvable:$true] %s35_s26 }
   0x2   :  { %s37_s28 = sshll.u32 %s550_s27, 4  ;;  %s20_s8 = sshll.u32 %s623_s1, 4  ;;  %s38_s28 = int_to_ptr.vmem [resolvable:$true] %s37_s28  ;;  %s21_s8 = int_to_ptr.hbm [resolvable:$true] %s20_s8 }
   0x3   :  { %s551_s9 = smov 64   ;;  %s552_s10 = smov 4  }
   0x4   :  { %43 = dma.hbm_to_vmem [thread:$0]  %s36_s26, 1024, %s38_s28, [#allocation5], %s551_s9, %s551_s9, %s552_s10  }
   0x5   :  { %s553_s11 = smov [#allocation2]   ;;  %s50_s15 = sshll.u32 %s627_s5, 4  ;;  %s51_s15 = int_to_ptr.hbm [resolvable:$true] %s50_s15 }
   0x6   :  { %s22_s12 = sshll.u32 %s553_s11, 4  ;;  %s554_s3 = smov [#allocation6]   ;;  %s23_s12 = int_to_ptr.vmem [resolvable:$true] %s22_s12 }
   0x7   :  { %28 = dma.hbm_to_vmem [thread:$0]  %s21_s8, 1024, %s23_s12, [#allocation3], %s551_s9, %s551_s9, %s552_s10  }
   0x8   :  { %s52_s16 = sshll.u32 %s554_s3, 4  ;;  %s53_s16 = int_to_ptr.vmem [resolvable:$true] %s52_s16 }
   0x9   :  { %58 = dma.hbm_to_vmem [thread:$0]  %s51_s15, 1024, %s53_s16, [#allocation5], %s551_s9, %s551_s9, %s552_s10  }
   0xa   :  { %546 = dma.done.wait [#allocation3], 1024  }
   0xb   :  { %547 = vsyncadd [#allocation3], 4294966272 }
   0xc   :  { %548 = dma.done.wait [#allocation5], 2048  }
   0xd   :  { %549 = vsyncadd [#allocation5], 4294965248  ;;  %v449_v0 = vld [vmem:[#allocation2 + $0x38] sm:$0xff]  ;;  %v448_v1 = vld [vmem:[#allocation2 + $0x30] sm:$0xff] }
   0xe   :  { %149 = vmatpush.bf16.msra.mxu0 %v449_v0  ;;  %v457_v2 = vld [vmem:[#allocation4 + $0x38] sm:$0xff]  ;;  %v456_v3 = vld [vmem:[#allocation4 + $0x30] sm:$0xff]  ;;  %v447_v4 = vld [vmem:[#allocation2 + $0x28] sm:$0xff] }
   0xf   :  { %234 = vmatpush.bf16.msra.mxu1 %v457_v2  ;;  %v455_v5 = vld [vmem:[#allocation4 + $0x28] sm:$0xff]  ;;  %v446_v6 = vld [vmem:[#allocation2 + $0x20] sm:$0xff]  ;;  %v445_v8 = vld [vmem:[#allocation2 + $0x18] sm:$0xff] }
  0x10   :  { %v454_v7 = vld [vmem:[#allocation4 + $0x20] sm:$0xff]  ;;  %v444_v9 = vld [vmem:[#allocation2 + $0x10] sm:$0xff]  ;;  %v443_v10 = vld [vmem:[#allocation2 + $0x8] sm:$0xff] }
  0x11   :  { %v442_v11 = vld [vmem:[#allocation2] sm:$0xff]  ;;  %v453_v13 = vld [vmem:[#allocation4 + $0x18] sm:$0xff]  ;;  %v452_v14 = vld [vmem:[#allocation4 + $0x10] sm:$0xff] }
  0x12   :  { %150 = vmatpush.bf16.msra.mxu0 %v448_v1  ;;  %v441_v12 = vld [vmem:[%s622_s0] sm:$0xff]  ;;  %v451_v15 = vld [vmem:[#allocation4 + $0x8] sm:$0xff]  ;;  %v465_v17 = vld [vmem:[#allocation6 + $0x38] sm:$0xff] }
  0x13   :  { %235 = vmatpush.bf16.msra.mxu1 %v456_v3  ;;  %v450_v16 = vld [vmem:[#allocation4] sm:$0xff]  ;;  %319 = vmatpush.bf16.msra.mxu2 %v465_v17  ;;  %v464_v18 = vld [vmem:[#allocation6 + $0x30] sm:$0xff]  ;;  %v463_v19 = vld [vmem:[#allocation6 + $0x28] sm:$0xff] }
  0x14   :  { %v462_v20 = vld [vmem:[#allocation6 + $0x20] sm:$0xff]  ;;  %v461_v29 = vld [vmem:[#allocation6 + $0x18] sm:$0xff]  ;;  %v460_v30 = vld [vmem:[#allocation6 + $0x10] sm:$0xff] }
  0x15   :  { %v471_v22 = vld [vmem:[%s624_s2] ss:$0 sm:$0xff]  ;;  %v459_v31 = vld [vmem:[#allocation6 + $0x8] sm:$0xff] }
  0x16   :  { %151 = vmatpush.bf16.msra.mxu0 %v447_v4  ;;  %v458_v32 = vld [vmem:[#allocation6] sm:$0xff] }
  0x17   :  { %236 = vmatpush.bf16.msra.mxu1 %v455_v5  ;;  %320 = vmatpush.bf16.msra.mxu2 %v464_v18  ;;  %v472_v34 = vld [vmem:[%s626_s4] ss:$0 sm:$0xff] }
  0x18   :  { %v473_v41 = vld [vmem:[%s628_s6] ss:$0 sm:$0xff] }
  0x1a   :  { %152 = vmatpush.bf16.msra.mxu0 %v446_v6 }
  0x1b   :  { %237 = vmatpush.bf16.msra.mxu1 %v454_v7  ;;  %321 = vmatpush.bf16.msra.mxu2 %v463_v19 }
  0x1e   :  { %153 = vmatpush.bf16.msra.mxu0 %v445_v8 }
  0x1f   :  { %238 = vmatpush.bf16.msra.mxu1 %v453_v13  ;;  %322 = vmatpush.bf16.msra.mxu2 %v462_v20 }
  0x22   :  { %154 = vmatpush.bf16.msra.mxu0 %v444_v9 }
  0x23   :  { %239 = vmatpush.bf16.msra.mxu1 %v452_v14  ;;  %323 = vmatpush.bf16.msra.mxu2 %v461_v29 }
  0x26   :  { %155 = vmatpush.bf16.msra.mxu0 %v443_v10 }
  0x27   :  { %240 = vmatpush.bf16.msra.mxu1 %v451_v15  ;;  %324 = vmatpush.bf16.msra.mxu2 %v460_v30 }
  0x2a   :  { %156 = vmatpush.bf16.msra.mxu0 %v442_v11 }
  0x2b   :  { %241 = vmatpush.bf16.msra.mxu1 %v450_v16  ;;  %325 = vmatpush.bf16.msra.mxu2 %v459_v31 }
  0x2d   :  { %157 = vmatmul.bf16.vlgmr.msra.gmra.mxu0 %v441_v12 }
  0x2f   :  { %326 = vmatpush.bf16.msra.mxu2 %v458_v32 }
  0xaa   :  { %v158_v21 = vpop.f32.mrf.mxu0 }
  0xab   :  { %v159_v23 = vadd.f32 %v471_v22, %v158_v21 }
  0xad   :  { %v163_v26 = vmax.f32 %v159_v23, 0.0 }
  0xb2   :  { %v160_v24 = vpop.f32.mrf.mxu0 }
  0xb3   :  { %v161_v25 = vadd.f32 %v471_v22, %v160_v24 }
  0xb5   :  { %v164_v27 = vmax.f32 %v161_v25, 0.0 }
  0xb7   :  { %v165_v28 = vpack.c.bf16 %v164_v27, %v163_v26 }
  0xb9   :  { %242 = vmatmul.bf16.vlgmr.msra.gmra.mxu1 %v165_v28 }
 0x136   :  { %v243_v33 = vpop.f32.mrf.mxu1 }
 0x137   :  { %v244_v35 = vadd.f32 %v472_v34, %v243_v33 }
 0x139   :  { %v248_v38 = vmax.f32 %v244_v35, 0.0 }
 0x13e   :  { %v245_v36 = vpop.f32.mrf.mxu1 }
 0x13f   :  { %v246_v37 = vadd.f32 %v472_v34, %v245_v36 }
 0x141   :  { %v249_v39 = vmax.f32 %v246_v37, 0.0 }
 0x143   :  { %v250_v40 = vpack.c.bf16 %v249_v39, %v248_v38 }
 0x145   :  { %327 = vmatmul.bf16.vlgmr.msra.gmra.mxu2 %v250_v40 }
 0x1c8   :  { %v328_v42 = vpop.f32.mrf.mxu2 }
 0x1c9   :  { %v329_v43 = vadd.f32 %v473_v41, %v328_v42 }
 0x1cb   :  { %333 = vst [vmem:[%s629_s7] sm:$0xff] %v329_v43 }
 0x1d0   :  { %v330_v44 = vpop.f32.mrf.mxu2 }
 0x1d1   :  { %v331_v45 = vadd.f32 %v473_v41, %v330_v44 }
 0x1d3   :  { %334 = vst [vmem:[%s629_s7 + $0x8] sm:$0xff] %v331_v45 }
 0x1d4   :  { %339 = vsyncpa [#allocation3], 1 }
 0x1d5   :  { %340 = vsyncpa [#allocation5], 1 }

</bundles_post_ra>
